<compile_context>
chip_gen: v7x
topology: tpu7x:2x2x1
jax: 0.10.0
libtpu: 0.0.40
codegen_flags: <defaults>
</compile_context>

<pallas_src>
import functools

import jax
import jax.numpy as jnp
from jax import lax
from jax.experimental import pallas as pl
from jax.experimental.pallas import tpu as pltpu


def _round_up(v, m):
    return (v + m - 1) // m * m


def _choose_chunk(d_pad, n_pad, itemsize, requested=None):
    """Pick a lane-aligned chunk width that exactly tiles d_pad."""
    if requested is not None:
        cols = min(_round_up(int(requested), 128), d_pad)
    else:
        # ~2 MiB streamed per operand per step, >= 1024 cols when affordable,
        # but keep the double-buffered window under ~8 MiB per operand.
        cols = max((2 << 20) // max(1, n_pad * itemsize), 1024)
        cap = max(128, ((8 << 20) // (2 * n_pad * itemsize)) // 128 * 128)
        cols = min(cols, cap, 4096, d_pad)
        cols = max(128, cols // 128 * 128)
    # d_pad is a multiple of 128, so this terminates at cols=128 at worst.
    while d_pad % cols != 0:
        cols -= 128
    return cols


def _hsic_unbiased_kernel(x_ref, y_ref, o_ref, zz_x_ref, zz_y_ref,
                          *, n, n_pad, sigma_x, sigma_y,
                          n_chunks_x, n_chunks_y):
    """Grid axis = D-chunks. Accumulate gram matrices, finalize at last step."""
    k = pl.program_id(0)
    n_steps = pl.num_programs(0)
    total = max(n_chunks_x, n_chunks_y)        # static python int

    @pl.when(k == 0)
    def _init():
        zz_x_ref[...] = jnp.zeros_like(zz_x_ref)
        zz_y_ref[...] = jnp.zeros_like(zz_y_ref)
        o_ref[0, 0] = jnp.float32(0.0)

    # Contract on the last dims of both operands -> MXU-friendly x @ x.T with
    # no explicit transpose/relayout; f32 accumulation, native input dtype.
    dn = (((1,), (1,)), ((), ()))

    def _upd_x():
        xc = x_ref[...]
        zz_x_ref[...] += lax.dot_general(
            xc, xc, dimension_numbers=dn, preferred_element_type=jnp.float32)

    def _upd_y():
        yc = y_ref[...]
        zz_y_ref[...] += lax.dot_general(
            yc, yc, dimension_numbers=dn, preferred_element_type=jnp.float32)

    # Static fast path: no pl.when when the operand spans the whole grid.
    if n_chunks_x == total:
        _upd_x()
    else:
        pl.when(k < n_chunks_x)(_upd_x)
    if n_chunks_y == total:
        _upd_y()
    else:
        pl.when(k < n_chunks_y)(_upd_y)

    @pl.when(k == n_steps - 1)
    def _finalize():
        need_mask = (n_pad != n)               # static python bool
        # NxN diagonal selector from two thin iotas (no NxN int32 temporaries).
        is_diag = (lax.broadcasted_iota(jnp.int32, (n_pad, 1), 0)
                   == lax.broadcasted_iota(jnp.int32, (1, n_pad), 1))
        if need_mask:
            lane_valid = (lax.broadcasted_iota(jnp.int32, (1, n_pad), 1)
                          < n).astype(jnp.float32)          # (1, n_pad)
            sub_valid = (lax.broadcasted_iota(jnp.int32, (n_pad, 1), 0)
                         < n).astype(jnp.float32)           # (n_pad, 1)

        nf = jnp.float32(n)

        def gram_stats(zz, sigma):
            gamma = jnp.float32(1.0 / (2.0 * float(sigma) * float(sigma)))
            # squared norms = diag(zz); d[j, j] is then exactly 0.
            sq_row = jnp.sum(jnp.where(is_diag, zz, 0.0),
                             axis=0, keepdims=True)          # (1, n_pad)
            d = sq_row.T + sq_row - 2.0 * zz                  # (n_pad, n_pad)
            K = jnp.exp(-gamma * d)
            # diag(K) is analytically exactly 1 (masked to valid columns).
            if need_mask:
                K = K * lane_valid * sub_valid
                diag = lane_valid
            else:
                diag = jnp.ones((1, n_pad), jnp.float32)
            colsum = jnp.sum(K, axis=0, keepdims=True)        # (1, n_pad)
            return K, diag, colsum

        K, diag_k, colsum_k = gram_stats(zz_x_ref[...], sigma_x)
        L, diag_l, colsum_l = gram_stats(zz_y_ref[...], sigma_y)

        # trace(tK @ tL) = sum_ij (K[i,j]-K[j,j]) * (L[i,j]-L[i,i])
        # (L symmetric) -> pure VPU elementwise + reduce, no N^3 matmul.
        trace_term = jnp.sum((K - diag_k) * (L - diag_l.T))

        # tK / tL reductions derived without materializing tK / tL:
        #   sum(tK)       = sum(K)       - n * sum(diag K)
        #   colsum(tK)[j] = colsum(K)[j] - n * K[j,j]
        sum_tk = jnp.sum(colsum_k) - nf * jnp.sum(diag_k)
        sum_tl = jnp.sum(colsum_l) - nf * jnp.sum(diag_l)
        colsum_tk = colsum_k - nf * diag_k
        colsum_tl = colsum_l - nf * diag_l
        dot_term = jnp.sum(colsum_tk * colsum_tl)

        hsic = (trace_term
                + sum_tk * sum_tl / (nf - 1.0) / (nf - 2.0)
                - 2.0 * dot_term / (nf - 2.0))
        o_ref[0, 0] = hsic / (nf * (nf - 3.0))


def _clamped_map(n_chunks):
    if n_chunks == 1:
        return lambda k: (0, 0)
    last = n_chunks - 1
    return lambda k: (0, jnp.minimum(k, last))


def hsic_unbiased(input1, input2, sigma_x, sigma_y=None, *, d_chunk=None):
    """Pallas-backed HSIC.forward (algorithm='unbiased', RBF kernels)."""
    if sigma_y is None:
        sigma_y = sigma_x
    input1 = jnp.asarray(input1)
    input2 = jnp.asarray(input2)
    n, d1 = input1.shape
    n2, d2 = input2.shape
    assert n == n2, "input1 and input2 must have the same batch size"
    if n < 4:
        raise ValueError("unbiased HSIC requires N >= 4")

    # Rows padded to a sublane multiple (8); padded rows masked out in-kernel.
    n_pad = _round_up(max(n, 8), 8)
    it1 = input1.dtype.itemsize
    it2 = input2.dtype.itemsize

    # Per-input lane-rounded widths and chunking (the narrow input is NOT
    # padded up to the wide one's width).
    d_pad_x = _round_up(d1, 128)
    d_pad_y = _round_up(d2, 128)
    ck_x = _choose_chunk(d_pad_x, n_pad, it1, d_chunk)
    ck_y = _choose_chunk(d_pad_y, n_pad, it2, d_chunk)
    n_chunks_x = d_pad_x // ck_x
    n_chunks_y = d_pad_y // ck_y
    n_steps = max(n_chunks_x, n_chunks_y)

    def _pad(a, rows, cols):
        nr, nc = a.shape
        if nr == rows and nc == cols:
            return a        # no host-side copy when already aligned
        return jnp.pad(a, ((0, rows - nr), (0, cols - nc)))

    x = _pad(input1, n_pad, d_pad_x)
    y = _pad(input2, n_pad, d_pad_y)

    kernel = functools.partial(
        _hsic_unbiased_kernel, n=n, n_pad=n_pad,
        sigma_x=float(sigma_x), sigma_y=float(sigma_y),
        n_chunks_x=n_chunks_x, n_chunks_y=n_chunks_y)

    x_map = (lambda k: (0, k)) if n_chunks_x == n_steps else _clamped_map(n_chunks_x)
    y_map = (lambda k: (0, k)) if n_chunks_y == n_steps else _clamped_map(n_chunks_y)

    # VMEM budget: 2 resident NxN f32 gram scratches + finalize transients
    # (d, K, L, masks ~ 5 NxN f32-equivalents) + double-buffered input chunks.
    vmem_est = (7 * n_pad * n_pad * 4
                + 2 * 2 * n_pad * ck_x * it1
                + 2 * 2 * n_pad * ck_y * it2
                + (2 << 20))
    try:
        cap = int(pltpu.get_tpu_info().vmem_capacity_bytes)
    except Exception:
        cap = 64 << 20
    if cap >= (96 << 20):
        ceiling = cap - (16 << 20)                 # v5e/v6e: ~112 MiB usable
    else:
        ceiling = min(cap - (8 << 20), 56 << 20)   # v7x: headroom under 64 MiB
    vmem_limit = int(min(max(vmem_est, 32 << 20), ceiling))

    cost = pl.CostEstimate(
        flops=int(2 * n * n * (d1 + d2) + 12 * n * n),
        transcendentals=int(2 * n_pad * n_pad),
        bytes_accessed=int(n * d1 * it1 + n * d2 * it2 + 4))

    out = pl.pallas_call(
        kernel,
        out_shape=jax.ShapeDtypeStruct((1, 1), jnp.float32),
        grid=(n_steps,),
        in_specs=[
            pl.BlockSpec((n_pad, ck_x), x_map),
            pl.BlockSpec((n_pad, ck_y), y_map),
        ],
        out_specs=pl.BlockSpec(memory_space=pltpu.MemorySpace.SMEM),
        scratch_shapes=[
            pltpu.VMEM((n_pad, n_pad), jnp.float32),   # zz_x accumulator
            pltpu.VMEM((n_pad, n_pad), jnp.float32),   # zz_y accumulator
        ],
        compiler_params=pltpu.CompilerParams(
            dimension_semantics=("arbitrary",),
            vmem_limit_bytes=vmem_limit),
        cost_estimate=cost,
    )(x, y)
    return out[0, 0]


def _hsic_unbiased_ref(x, y, sigma_x, sigma_y):
    """Pure-JAX reference (mirrors the PyTorch code line-by-line)."""
    def rbf(z, sigma):
        zz = z @ z.T
        sq = jnp.sum(z * z, axis=1)
        d = sq[:, None] + sq[None, :] - 2.0 * zz
        return jnp.exp(-d / (2.0 * sigma * sigma))

    K = rbf(x, sigma_x)
    L = rbf(y, sigma_y)
    tK = K - jnp.diagonal(K)            # broadcasts like torch: K[i,j]-K[j,j]
    tL = L - jnp.diagonal(L)
    n = x.shape[0]
    hsic = (jnp.trace(tK @ tL)
            + jnp.sum(tK) * jnp.sum(tL) / (n - 1) / (n - 2)
            - 2.0 * jnp.dot(jnp.sum(tK, 0), jnp.sum(tL, 0)) / (n - 2))
    return hsic / (n * (n - 3))


if __name__ == "__main__":
    key = jax.random.PRNGKey(0)
    k1, k2, k3, k4, k5 = jax.random.split(key, 5)

    # batch of 8 samples: input1 = flattened NCHW activations (8, 4, 8, 8),
    # input2 = a 32-d feature vector correlated with input1 (ReBias-style use).
    N = 8
    x_img = jax.random.normal(k1, (N, 4, 8, 8), dtype=jnp.float32)
    x = x_img.reshape(N, -1)                                   # (8, 256)
    w = jax.random.normal(k2, (x.shape[1], 32), dtype=jnp.float32)
    w = w / jnp.sqrt(jnp.float32(x.shape[1]))
    y = jnp.tanh(x @ w) + 0.1 * jax.random.normal(k3, (N, 32), dtype=jnp.float32)

    sigma_x, sigma_y = 16.0, 4.0
    ref = _hsic_unbiased_ref(x, y, sigma_x, sigma_y)

    # default (adaptive) chunking
    out = jax.block_until_ready(hsic_unbiased(x, y, sigma_x, sigma_y))
    assert jnp.allclose(out, ref, atol=1e-4, rtol=1e-4), (out, ref)

    # multi-chunk D-tiled path + mismatched chunk counts for x / y
    out2 = jax.block_until_ready(hsic_unbiased(x, y, sigma_x, sigma_y, d_chunk=128))
    assert jnp.allclose(out2, ref, atol=1e-4, rtol=1e-4), (out2, ref)

    # ragged batch (N not a multiple of 8) exercises the row-mask path
    N2 = 10
    x2 = jax.random.normal(k4, (N2, 48), dtype=jnp.float32)
    y2 = jax.random.normal(k5, (N2, 24), dtype=jnp.float32) + 0.5 * x2[:, :24]
    ref2 = _hsic_unbiased_ref(x2, y2, 8.0, 8.0)
    out3 = jax.block_until_ready(hsic_unbiased(x2, y2, 8.0))
    assert jnp.allclose(out3, ref2, atol=1e-4, rtol=1e-4), (out3, ref2)

    print("KERNEL_OK")
</pallas_src>

<mosaic_0001>
module attributes {stable_mosaic.version = 11 : i64} {
  func.func @_hsic_unbiased_kernel(%arg0: i32, %arg1: memref<8x256xf32, #tpu.memory_space<vmem>>, %arg2: memref<8x128xf32, #tpu.memory_space<vmem>>, %arg3: memref<1x1xf32, #tpu.memory_space<smem>>, %arg4: memref<8x8xf32, #tpu.memory_space<vmem>>, %arg5: memref<8x8xf32, #tpu.memory_space<vmem>>) attributes {dimension_semantics = [#tpu.dimension_semantics<arbitrary>], iteration_bounds = array<i64: 1>, scalar_prefetch = 0 : i64, scratch_operands = 2 : i64, tpu.core_type = #tpu.core_type<tc>, window_params = [{transform_indices = @transform_0, window_bounds = array<i64: 8, 256>}, {transform_indices = @transform_1, window_bounds = array<i64: 8, 128>}, {transform_indices = @transform_2, window_bounds = array<i64: 1, 1>}]} {
    %c0_i32 = arith.constant 0 : i32
    %0 = arith.cmpi eq, %arg0, %c0_i32 : i32
    %1 = arith.extui %0 : i1 to i32
    %c0_i32_0 = arith.constant 0 : i32
    %2 = arith.cmpi ne, %1, %c0_i32_0 : i32
    scf.if %2 {
      %cst_15 = arith.constant 0.000000e+00 : f32
      %16 = vector.broadcast %cst_15 : f32 to vector<8x8xf32>
      %c0_16 = arith.constant 0 : index
      %c0_17 = arith.constant 0 : index
      %17 = vector.load %arg4[%c0_16, %c0_17] : memref<8x8xf32, #tpu.memory_space<vmem>>, vector<8x8xf32>
      tpu.vector_store %arg4[%c0_16, %c0_17], %16 {strides = array<i32>} : memref<8x8xf32, #tpu.memory_space<vmem>>, vector<8x8xf32>,
      %cst_18 = arith.constant 0.000000e+00 : f32
      %18 = vector.broadcast %cst_18 : f32 to vector<8x8xf32>
      %c0_19 = arith.constant 0 : index
      %c0_20 = arith.constant 0 : index
      %19 = vector.load %arg5[%c0_19, %c0_20] : memref<8x8xf32, #tpu.memory_space<vmem>>, vector<8x8xf32>
      tpu.vector_store %arg5[%c0_19, %c0_20], %18 {strides = array<i32>} : memref<8x8xf32, #tpu.memory_space<vmem>>, vector<8x8xf32>,
      %cst_21 = arith.constant 0.000000e+00 : f32
      %c0_22 = arith.constant 0 : index
      %c0_23 = arith.constant 0 : index
      %20 = memref.load %arg3[%c0_22, %c0_23] : memref<1x1xf32, #tpu.memory_space<smem>>
      memref.store %cst_21, %arg3[%c0_22, %c0_23] : memref<1x1xf32, #tpu.memory_space<smem>>
    } else {
    }
    %c0 = arith.constant 0 : index
    %c0_1 = arith.constant 0 : index
    %3 = vector.load %arg1[%c0, %c0_1] : memref<8x256xf32, #tpu.memory_space<vmem>>, vector<8x256xf32>
    %c0_2 = arith.constant 0 : index
    %c0_3 = arith.constant 0 : index
    %4 = vector.load %arg4[%c0_2, %c0_3] : memref<8x8xf32, #tpu.memory_space<vmem>>, vector<8x8xf32>
    %cst = arith.constant dense<0.000000e+00> : vector<8x8xf32>
    %5 = tpu.matmul %3, %3, %cst {dimension_numbers = #tpu.dot_dimension_numbers<[1], [1], [0], [0], [0, 0, 1, 0], [], []>} : vector<8x256xf32>, vector<8x256xf32>, vector<8x8xf32> -> vector<8x8xf32>
    %6 = arith.addf %4, %5 : vector<8x8xf32>
    %c0_4 = arith.constant 0 : index
    %c0_5 = arith.constant 0 : index
    %7 = vector.load %arg4[%c0_4, %c0_5] : memref<8x8xf32, #tpu.memory_space<vmem>>, vector<8x8xf32>
    tpu.vector_store %arg4[%c0_4, %c0_5], %6 {strides = array<i32>} : memref<8x8xf32, #tpu.memory_space<vmem>>, vector<8x8xf32>,
    %c0_6 = arith.constant 0 : index
    %c0_7 = arith.constant 0 : index
    %8 = vector.load %arg2[%c0_6, %c0_7] : memref<8x128xf32, #tpu.memory_space<vmem>>, vector<8x128xf32>
    %c0_8 = arith.constant 0 : index
    %c0_9 = arith.constant 0 : index
    %9 = vector.load %arg5[%c0_8, %c0_9] : memref<8x8xf32, #tpu.memory_space<vmem>>, vector<8x8xf32>
    %cst_10 = arith.constant dense<0.000000e+00> : vector<8x8xf32>
    %10 = tpu.matmul %8, %8, %cst_10 {dimension_numbers = #tpu.dot_dimension_numbers<[1], [1], [0], [0], [0, 0, 1, 0], [], []>} : vector<8x128xf32>, vector<8x128xf32>, vector<8x8xf32> -> vector<8x8xf32>
    %11 = arith.addf %9, %10 : vector<8x8xf32>
    %c0_11 = arith.constant 0 : index
    %c0_12 = arith.constant 0 : index
    %12 = vector.load %arg5[%c0_11, %c0_12] : memref<8x8xf32, #tpu.memory_space<vmem>>, vector<8x8xf32>
    tpu.vector_store %arg5[%c0_11, %c0_12], %11 {strides = array<i32>} : memref<8x8xf32, #tpu.memory_space<vmem>>, vector<8x8xf32>,
    %c0_i32_13 = arith.constant 0 : i32
    %13 = arith.cmpi eq, %arg0, %c0_i32_13 : i32
    %14 = arith.extui %13 : i1 to i32
    %c0_i32_14 = arith.constant 0 : i32
    %15 = arith.cmpi ne, %14, %c0_i32_14 : i32
    scf.if %15 {
      %16 = tpu.iota {dimensions = array<i32: 0>} : vector<8x1xi32>
      %17 = tpu.iota {dimensions = array<i32: 1>} : vector<1x8xi32>
      %18 = vector.broadcast %16 : vector<8x1xi32> to vector<8x8xi32>
      %19 = vector.broadcast %17 : vector<1x8xi32> to vector<8x8xi32>
      %20 = arith.cmpi eq, %18, %19 : vector<8x8xi32>
      %c0_15 = arith.constant 0 : index
      %c0_16 = arith.constant 0 : index
      %21 = vector.load %arg4[%c0_15, %c0_16] : memref<8x8xf32, #tpu.memory_space<vmem>>, vector<8x8xf32>
      %cst_17 = arith.constant 0.000000e+00 : f32
      %22 = vector.broadcast %cst_17 : f32 to vector<8x8xf32>
      %23 = arith.select %20, %21, %22 : vector<8x8xi1>, vector<8x8xf32>
      %cst_18 = arith.constant dense<0.000000e+00> : vector<8xf32>
      %24 = vector.multi_reduction <add>, %23, %cst_18 [0] : vector<8x8xf32> to vector<8xf32>
      %25 = vector.shape_cast %24 : vector<8xf32> to vector<1x8xf32>
      %26 = tpu.transpose %25, [1, 0] : vector<1x8xf32> -> vector<8x1xf32>
      %27 = vector.broadcast %26 : vector<8x1xf32> to vector<8x8xf32>
      %28 = vector.broadcast %25 : vector<1x8xf32> to vector<8x8xf32>
      %29 = arith.addf %27, %28 : vector<8x8xf32>
      %cst_19 = arith.constant 2.000000e+00 : f32
      %30 = vector.broadcast %cst_19 : f32 to vector<8x8xf32>
      %31 = arith.mulf %30, %21 : vector<8x8xf32>
      %32 = arith.subf %29, %31 : vector<8x8xf32>
      %cst_20 = arith.constant 0.000000e+00 : f32
      %cst_21 = arith.constant 0.001953125 : f32
      %33 = arith.subf %cst_20, %cst_21 : f32
      %34 = vector.broadcast %33 : f32 to vector<8x8xf32>
      %35 = arith.mulf %34, %32 : vector<8x8xf32>
      %36 = math.exp %35 : vector<8x8xf32>
      %cst_22 = arith.constant 1.000000e+00 : f32
      %37 = vector.broadcast %cst_22 : f32 to vector<1x8xf32>
      %cst_23 = arith.constant dense<0.000000e+00> : vector<8xf32>
      %38 = vector.multi_reduction <add>, %36, %cst_23 [0] : vector<8x8xf32> to vector<8xf32>
      %39 = vector.shape_cast %38 : vector<8xf32> to vector<1x8xf32>
      %c0_24 = arith.constant 0 : index
      %c0_25 = arith.constant 0 : index
      %40 = vector.load %arg5[%c0_24, %c0_25] : memref<8x8xf32, #tpu.memory_space<vmem>>, vector<8x8xf32>
      %cst_26 = arith.constant 0.000000e+00 : f32
      %41 = vector.broadcast %cst_26 : f32 to vector<8x8xf32>
      %42 = arith.select %20, %40, %41 : vector<8x8xi1>, vector<8x8xf32>
      %cst_27 = arith.constant dense<0.000000e+00> : vector<8xf32>
      %43 = vector.multi_reduction <add>, %42, %cst_27 [0] : vector<8x8xf32> to vector<8xf32>
      %44 = vector.shape_cast %43 : vector<8xf32> to vector<1x8xf32>
      %45 = tpu.transpose %44, [1, 0] : vector<1x8xf32> -> vector<8x1xf32>
      %46 = vector.broadcast %45 : vector<8x1xf32> to vector<8x8xf32>
      %47 = vector.broadcast %44 : vector<1x8xf32> to vector<8x8xf32>
      %48 = arith.addf %46, %47 : vector<8x8xf32>
      %cst_28 = arith.constant 2.000000e+00 : f32
      %49 = vector.broadcast %cst_28 : f32 to vector<8x8xf32>
      %50 = arith.mulf %49, %40 : vector<8x8xf32>
      %51 = arith.subf %48, %50 : vector<8x8xf32>
      %cst_29 = arith.constant 0.000000e+00 : f32
      %cst_30 = arith.constant 3.125000e-02 : f32
      %52 = arith.subf %cst_29, %cst_30 : f32
      %53 = vector.broadcast %52 : f32 to vector<8x8xf32>
      %54 = arith.mulf %53, %51 : vector<8x8xf32>
      %55 = math.exp %54 : vector<8x8xf32>
      %cst_31 = arith.constant 1.000000e+00 : f32
      %56 = vector.broadcast %cst_31 : f32 to vector<1x8xf32>
      %cst_32 = arith.constant dense<0.000000e+00> : vector<8xf32>
      %57 = vector.multi_reduction <add>, %55, %cst_32 [0] : vector<8x8xf32> to vector<8xf32>
      %58 = vector.shape_cast %57 : vector<8xf32> to vector<1x8xf32>
      %59 = vector.broadcast %37 : vector<1x8xf32> to vector<8x8xf32>
      %60 = arith.subf %36, %59 : vector<8x8xf32>
      %61 = tpu.transpose %56, [1, 0] : vector<1x8xf32> -> vector<8x1xf32>
      %62 = vector.broadcast %61 : vector<8x1xf32> to vector<8x8xf32>
      %63 = arith.subf %55, %62 : vector<8x8xf32>
      %64 = arith.mulf %60, %63 : vector<8x8xf32>
      %65 = vector.shape_cast %64 : vector<8x8xf32> to vector<1x8x8xf32>
      %cst_33 = arith.constant dense<0.000000e+00> : vector<1xf32>
      %66 = vector.multi_reduction <add>, %65, %cst_33 [1, 2] : vector<1x8x8xf32> to vector<1xf32>
      %67 = vector.shape_cast %66 : vector<1xf32> to vector<1x1x1xf32>
      %68 = vector.extract %67[0, 0, 0] : f32 from vector<1x1x1xf32>
      %69 = vector.shape_cast %39 : vector<1x8xf32> to vector<1x1x8xf32>
      %cst_34 = arith.constant dense<0.000000e+00> : vector<1xf32>
      %70 = vector.multi_reduction <add>, %69, %cst_34 [1, 2] : vector<1x1x8xf32> to vector<1xf32>
      %71 = vector.shape_cast %70 : vector<1xf32> to vector<1x1x1xf32>
      %72 = vector.extract %71[0, 0, 0] : f32 from vector<1x1x1xf32>
      %73 = vector.shape_cast %37 : vector<1x8xf32> to vector<1x1x8xf32>
      %cst_35 = arith.constant dense<0.000000e+00> : vector<1xf32>
      %74 = vector.multi_reduction <add>, %73, %cst_35 [1, 2] : vector<1x1x8xf32> to vector<1xf32>
      %75 = vector.shape_cast %74 : vector<1xf32> to vector<1x1x1xf32>
      %76 = vector.extract %75[0, 0, 0] : f32 from vector<1x1x1xf32>
      %cst_36 = arith.constant 8.000000e+00 : f32
      %77 = arith.mulf %cst_36, %76 : f32
      %78 = arith.subf %72, %77 : f32
      %79 = vector.shape_cast %58 : vector<1x8xf32> to vector<1x1x8xf32>
      %cst_37 = arith.constant dense<0.000000e+00> : vector<1xf32>
      %80 = vector.multi_reduction <add>, %79, %cst_37 [1, 2] : vector<1x1x8xf32> to vector<1xf32>
      %81 = vector.shape_cast %80 : vector<1xf32> to vector<1x1x1xf32>
      %82 = vector.extract %81[0, 0, 0] : f32 from vector<1x1x1xf32>
      %83 = vector.shape_cast %56 : vector<1x8xf32> to vector<1x1x8xf32>
      %cst_38 = arith.constant dense<0.000000e+00> : vector<1xf32>
      %84 = vector.multi_reduction <add>, %83, %cst_38 [1, 2] : vector<1x1x8xf32> to vector<1xf32>
      %85 = vector.shape_cast %84 : vector<1xf32> to vector<1x1x1xf32>
      %86 = vector.extract %85[0, 0, 0] : f32 from vector<1x1x1xf32>
      %cst_39 = arith.constant 8.000000e+00 : f32
      %87 = arith.mulf %cst_39, %86 : f32
      %88 = arith.subf %82, %87 : f32
      %cst_40 = arith.constant 8.000000e+00 : f32
      %89 = vector.broadcast %cst_40 : f32 to vector<1x8xf32>
      %90 = arith.mulf %89, %37 : vector<1x8xf32>
      %91 = arith.subf %39, %90 : vector<1x8xf32>
      %cst_41 = arith.constant 8.000000e+00 : f32
      %92 = vector.broadcast %cst_41 : f32 to vector<1x8xf32>
      %93 = arith.mulf %92, %56 : vector<1x8xf32>
      %94 = arith.subf %58, %93 : vector<1x8xf32>
      %95 = arith.mulf %91, %94 : vector<1x8xf32>
      %96 = vector.shape_cast %95 : vector<1x8xf32> to vector<1x1x8xf32>
      %cst_42 = arith.constant dense<0.000000e+00> : vector<1xf32>
      %97 = vector.multi_reduction <add>, %96, %cst_42 [1, 2] : vector<1x1x8xf32> to vector<1xf32>
      %98 = vector.shape_cast %97 : vector<1xf32> to vector<1x1x1xf32>
      %99 = vector.extract %98[0, 0, 0] : f32 from vector<1x1x1xf32>
      %100 = arith.mulf %78, %88 : f32
      %cst_43 = arith.constant 8.000000e+00 : f32
      %cst_44 = arith.constant 1.000000e+00 : f32
      %101 = arith.subf %cst_43, %cst_44 : f32
      %102 = arith.divf %100, %101 : f32
      %cst_45 = arith.constant 8.000000e+00 : f32
      %cst_46 = arith.constant 2.000000e+00 : f32
      %103 = arith.subf %cst_45, %cst_46 : f32
      %104 = arith.divf %102, %103 : f32
      %105 = arith.addf %68, %104 : f32
      %cst_47 = arith.constant 2.000000e+00 : f32
      %106 = arith.mulf %cst_47, %99 : f32
      %cst_48 = arith.constant 8.000000e+00 : f32
      %cst_49 = arith.constant 2.000000e+00 : f32
      %107 = arith.subf %cst_48, %cst_49 : f32
      %108 = arith.divf %106, %107 : f32
      %109 = arith.subf %105, %108 : f32
      %cst_50 = arith.constant 8.000000e+00 : f32
      %cst_51 = arith.constant 3.000000e+00 : f32
      %110 = arith.subf %cst_50, %cst_51 : f32
      %cst_52 = arith.constant 8.000000e+00 : f32
      %111 = arith.mulf %cst_52, %110 : f32
      %112 = arith.divf %109, %111 : f32
      %c0_53 = arith.constant 0 : index
      %c0_54 = arith.constant 0 : index
      %113 = memref.load %arg3[%c0_53, %c0_54] : memref<1x1xf32, #tpu.memory_space<smem>>
      memref.store %112, %arg3[%c0_53, %c0_54] : memref<1x1xf32, #tpu.memory_space<smem>>
    } else {
    }
    return
  }
  func.func @transform_0(%arg0: i32) -> (i32, i32) {
    %c0_i32 = arith.constant 0 : i32
    %c0_i32_0 = arith.constant 0 : i32
    return %c0_i32, %arg0 : i32, i32
  }
  func.func @transform_1(%arg0: i32) -> (i32, i32) {
    %c0_i32 = arith.constant 0 : i32
    %c0_i32_0 = arith.constant 0 : i32
    return %c0_i32, %arg0 : i32, i32
  }
  func.func @transform_2(%arg0: i32) -> (i32, i32) {
    %c0_i32 = arith.constant 0 : i32
    %c0_i32_0 = arith.constant 0 : i32
    %c0_i32_1 = arith.constant 0 : i32
    return %c0_i32, %c0_i32_0 : i32, i32
  }
}

</mosaic_0001>

<bundles_post_ra>
// kernel: tpu_custom_call.1
= control target key start
LH: loop header
LB: loop body
LE: loop exit
PB: predicated region body
PF: predicated region fallthrough
CT: control target
= control target key end

     0   :  { %7 = vsyncpa [#allocation5], 0  ;;  %s621_s0 = inlined_call_operand.hbm [shape: f32[8,256], index: 0, kind: input, shape index: {}]   ;;  %s622_s1 = inlined_call_operand.hbm [shape: f32[8,128], index: 1, kind: input, shape index: {}]   ;;  %s623_s2 = inlined_call_operand.hbm [shape: f32[1,1], index: 2, kind: output, shape index: {}]  }
   0x1   :  { %8 = vsyncpa [#allocation8], 0 }
   0x2   :  { %9 = vsyncpa [#allocation6], 0  ;;  %s545_s9 = smov [#allocation4]   ;;  %s546_s11 = smov [#allocation7]  }
   0x3   :  { %s16_s10 = sshll.u32 %s545_s9, 4  ;;  %s26_s12 = sshll.u32 %s546_s11, 4  ;;  %s17_s10 = int_to_ptr.vmem [resolvable:$true] %s16_s10  ;;  %s27_s12 = int_to_ptr.vmem [resolvable:$true] %s26_s12 }
   0x4   :  { %s485_s15 = scalar_lea.hbm %s621_s0, 256 }
   0x5   :  { %p486_p0 = scmp.ne.s32.totalorder %s621_s0, %s485_s15  ;;  %p489_p1 = scmp.lt.u32.totalorder %s485_s15, %s621_s0 }
   0x7   :  { %p491_p2 = pnand %p489_p1, %p486_p0 }
   0x9   :  { %494 = shalt.err (!%p491_p2)
}
   0xa   :  { %s495_s20 = scalar_lea.vmem %s17_s10, 256  ;;  %p500_p4 = scmp.lt.s32.totalorder %s17_s10, %s17_s10 }
   0xb   :  { %p496_p3 = scmp.ne.s32.totalorder %s17_s10, %s495_s20  ;;  %p501_p5 = scmp.lt.s32.totalorder %s495_s20, %s495_s20 }
   0xd   :  { %p502_p6 = por %p501_p5, %p500_p4 }
   0xf   :  { %p503_p7 = pnand %p502_p6, %p496_p3 }
  0x11   :  { %506 = shalt.err (!%p503_p7)
}
  0x12   :  { %19 = dma.hbm_to_vmem [thread:$0]  %s621_s0, 256, %s17_s10, [#allocation5]  }
  0x13   :  { %s507_s25 = scalar_lea.hbm %s622_s1, 128 }
  0x14   :  { %p508_p8 = scmp.ne.s32.totalorder %s622_s1, %s507_s25  ;;  %p511_p9 = scmp.lt.u32.totalorder %s507_s25, %s622_s1 }
  0x16   :  { %p513_p10 = pnand %p511_p9, %p508_p8 }
  0x18   :  { %516 = shalt.err (!%p513_p10)
}
  0x19   :  { %s517_s30 = scalar_lea.vmem %s27_s12, 128  ;;  %p522_p12 = scmp.lt.s32.totalorder %s27_s12, %s27_s12 }
  0x1a   :  { %p518_p11 = scmp.ne.s32.totalorder %s27_s12, %s517_s30  ;;  %p523_p13 = scmp.lt.s32.totalorder %s517_s30, %s517_s30 }
  0x1c   :  { %p524_p0 = por %p523_p13, %p522_p12 }
  0x1e   :  { %p525_p1 = pnand %p524_p0, %p518_p11 }
  0x20   :  { %528 = shalt.err (!%p525_p1)
}
  0x21   :  { %29 = dma.hbm_to_vmem [thread:$0]  %s622_s1, 128, %s27_s12, [#allocation8]  }
  0x22   :  { %539 = dma.done.wait [#allocation5], 256  }
  0x23   :  { %540 = vsyncadd [#allocation5], 4294967040 }
  0x24   :  { %541 = dma.done.wait [#allocation8], 128  }
  0x25   :  { %542 = vsyncadd [#allocation8], 4294967168  ;;  %vm40_vm0 = vcmask 64512   ;;  %v547_v0 = vmov 0.0   ;;  %vm548_vm1 = vmmov 0   ;;  %v46_v1 = vld [vmem:[#allocation4 + $0x8] sm:$0xff]  ;;  %v198_v8 = vlaneseq }
  0x26   :  { %41 = vst.msk [vmem:[#allocation2] sm:$0xff] %vm40_vm0, %v547_v0  ;;  %42 = vst.msk [vmem:[#allocation3] sm:$0xff] %vm40_vm0, %v547_v0  ;;  %456 = vmatprep.subr.mxu1 %v547_v0  ;;  %458 = vmatprep.mubr.msk.f32.mxu1 %vm548_vm1, %v547_v0  ;;  %v121_v2 = vld [vmem:[#allocation7] sm:$0xff]  ;;  %v45_v3 = vld [vmem:[#allocation4] sm:$0xff]  ;;  %v549_v4 = vmov 1.0   ;;  %v550_v33 = vmov 0  }
  0x27   :  { %48 = vmatprep.subr.mxu0 %v46_v1  ;;  %457 = vmatpush3.xpose.msra.mxu1 %v121_v2  ;;  %v199_v14 = vshrl.u32 %v198_v8, 7  ;;  %v201_v15 = vand.u32 127, %v198_v8  ;;  %vm371_vm3 = vcmask 57344   ;;  %s529_s21 = scalar_lea.hbm %s623_s2, 16 }
  0x28   :  { %49 = vmatpush1.xpose.msra.mxu0 %v45_v3  ;;  %112 = vmatprep.mubr.f32.mxu0 %v46_v1  ;;  %p530_p2 = scmp.ne.s32.totalorder %s623_s2, %s529_s21  ;;  %p533_p3 = scmp.lt.u32.totalorder %s529_s21, %s623_s2 }
  0x29   :  { %322 = vxpose.xlu1.b32.start.end [1/1] (short) (narrow) %v549_v4, 8  ;;  %vm202_vm2 = vcmp.eq.s32.totalorder %v199_v14, %v201_v15  ;;  %v382_v4 = vsel %vm371_vm3, 1.0, %v547_v0 }
  0x2a   :  { %459 = vmatmul.mubr.f32.vlgmr.msra.gmra.mrb[0].mxu1 %v121_v2  ;;  %p535_p4 = pnand %p533_p3, %p530_p2 }
  0x2b   :  { %113 = vmatmul.mubr.f32.vlgmr.msra.gmra.mrb[0].mxu0 %v45_v3 }
  0x2d   :  { %v122_v5 = vld [vmem:[#allocation3] sm:$0xff]  ;;  %v47_v6 = vld [vmem:[#allocation2] sm:$0xff] }
  0x47   :  { %479 = vset.pattern.permute.xlu1 %v550_v33 }
  0xa9   :  { %v338_v37 = vpop.trf.xlu1 }
  0xfd   :  { %v189_v7 = vpop.f32.mrb[0].mxu1 }
  0xfe   :  { %v193_v9 = vadd.f32 %v189_v7, %v122_v5  ;;  %v114_v10 = vpop.f32.mrb[0].mxu0  ;;  %v460_v11 = vpop.f32.mrb[1].mxu1 }
  0xff   :  { %v118_v12 = vadd.f32 %v114_v10, %v47_v6  ;;  %v116_v13 = vpop.f32.mrb[1].mxu0 }
 0x100   :  { %194 = vst.msk [vmem:[#allocation3] sm:$0xff] %vm40_vm0, %v193_v9 }
 0x101   :  { %120 = vst.msk [vmem:[#allocation2] sm:$0xff] %vm40_vm0, %v118_v12 }
 0x107   :  { %v262_v16 = vld [vmem:[#allocation3] sm:$0xff] }
 0x108   :  { %v263_v17 = vsel %vm202_vm2, %v262_v16, 0.0  ;;  %v203_v18 = vld [vmem:[#allocation2] sm:$0xff]  ;;  %v309_v39 = vmul.f32 2.0, %v262_v16 }
 0x109   :  { %v264_v19 = vsel %vm40_vm0, %v263_v17, 0.0  ;;  %v204_v20 = vsel %vm202_vm2, %v203_v18, 0.0  ;;  %v250_v44 = vmul.f32 2.0, %v203_v18 }
 0x10a   :  { %v265_v21 = vrot.slane %v264_v19, 4  ;;  %v205_v22 = vsel %vm40_vm0, %v204_v20, 0.0 }
 0x10b   :  { %v206_v23 = vrot.slane %v205_v22, 4 }
 0x10c   :  { %v266_v24 = vadd.f32 %v265_v21, %v264_v19 }
 0x10d   :  { %v207_v25 = vadd.f32 %v206_v23, %v205_v22 }
 0x10e   :  { %v267_v26 = vrot.slane %v266_v24, 2 }
 0x10f   :  { %v208_v27 = vrot.slane %v207_v25, 2 }
 0x110   :  { %v268_v28 = vadd.f32 %v267_v26, %v266_v24 }
 0x111   :  { %v209_v29 = vadd.f32 %v208_v27, %v207_v25 }
 0x112   :  { %v269_v30 = vrot.slane %v268_v28, 1 }
 0x113   :  { %v210_v32 = vrot.slane %v209_v29, 1 }
 0x114   :  { %v270_v31 = vadd.f32 %v269_v30, %v268_v28 }
 0x115   :  { %v211_v34 = vadd.f32 %v210_v32, %v209_v29 }
 0x116   :  { %271 = vxpose.xlu0.b32.start.end [1/1] (short) (narrow) %v270_v31, 8 }
 0x11a   :  { %212 = vxpose.xlu0.b32.start.end [1/1] (short) (narrow) %v211_v34, 8 }
 0x143   :  { %480 = vset.pattern.permute.xlu0 %v550_v33 }
 0x196   :  { %v287_v35 = vpop.trf.xlu0 }
 0x197   :  { %305 = vperm.xlu0 %480, %v287_v35  }
 0x19a   :  { %v228_v36 = vpop.trf.xlu0 }
 0x19b   :  { %246 = vperm.xlu1 %479, %v228_v36  }
 0x19f   :  { %356 = vperm.xlu1 %479, %v338_v37  }
 0x216   :  { %v306_v38 = vpop.permute.xlu0 %305 }
 0x217   :  { %v308_v40 = vadd.f32 %v306_v38, %v270_v31 }
 0x219   :  { %v310_v41 = vsub.f32 %v308_v40, %v309_v39 }
 0x21a   :  { %v247_v42 = vpop.permute.xlu1 %246 }
 0x21b   :  { %v311_v43 = vmul.f32 -0.03125, %v310_v41  ;;  %v249_v45 = vadd.f32 %v247_v42, %v211_v34 }
 0x21d   :  { %v312_v46 = vmul.f32 1.442695, %v311_v43  ;;  %v251_v47 = vsub.f32 %v249_v45, %v250_v44 }
 0x21e   :  { %v357_v54 = vpop.permute.xlu1 %356 }
 0x21f   :  { %481 = vpow2.f32 %v312_v46  ;;  %v252_v48 = vmul.f32 -0.001953125, %v251_v47 }
 0x221   :  { %v253_v49 = vmul.f32 1.442695, %v252_v48 }
 0x223   :  { %483 = vpow2.f32 %v253_v49 }
 0x229   :  { %v482_v50 = vpop.eup %481 }
 0x22a   :  { %v314_v51 = vsel %vm40_vm0, %v482_v50, 0.0  ;;  %v359_v56 = vsub.f32 %v482_v50, %v357_v54 }
 0x22b   :  { %v315_v52 = vrot.slane %v314_v51, 4 }
 0x22d   :  { %v484_v53 = vpop.eup %483  ;;  %v316_v55 = vadd.f32 %v315_v52, %v314_v51 }
 0x22e   :  { %v451_v57 = vadd.f32 -1.0, %v484_v53  ;;  %v255_v58 = vsel %vm40_vm0, %v484_v53, 0.0 }
 0x22f   :  { %v317_v59 = vrot.slane %v316_v55, 2  ;;  %v256_v60 = vrot.slane %v255_v58, 4 }
 0x230   :  { %v360_v61 = vmul.f32 %v451_v57, %v359_v56 }
 0x231   :  { %v318_v62 = vadd.f32 %v317_v59, %v316_v55  ;;  %v257_v63 = vadd.f32 %v256_v60, %v255_v58 }
 0x232   :  { %v361_v1 = vsel %vm40_vm0, %v360_v61, 0.0 }
 0x233   :  { %362 = vadd.xlane.f32.xlu1 %v361_v1  ;;  %v319_v2 = vrot.slane %v318_v62, 1  ;;  %v258_v3 = vrot.slane %v257_v63, 2 }
 0x235   :  { %v259_v5 = vadd.f32 %v258_v3, %v257_v63  ;;  %v320_v6 = vadd.f32 %v319_v2, %v318_v62 }
 0x237   :  { %383 = vadd.xlane.f32.xlu1 %v382_v4  ;;  %v260_v7 = vrot.slane %v259_v5, 1  ;;  %v394_v9 = vsel %vm371_vm3, %v320_v6, 0.0  ;;  %v453_v12 = vadd.f32 -8.0, %v320_v6 }
 0x239   :  { %v261_v8 = vadd.f32 %v260_v7, %v259_v5 }
 0x23b   :  { %395 = vadd.xlane.f32.xlu1 %v394_v9  ;;  %v372_v10 = vsel %vm371_vm3, %v261_v8, 0.0  ;;  %v452_v11 = vadd.f32 -8.0, %v261_v8 }
 0x23c   :  { %373 = vadd.xlane.f32.xlu0 %v372_v10 }
 0x23d   :  { %v407_v13 = vmul.f32 %v453_v12, %v452_v11 }
 0x23f   :  { %v408_v14 = vsel %vm371_vm3, %v407_v13, 0.0 }
 0x240   :  { %409 = vadd.xlane.f32.xlu0 %v408_v14 }
 0x2c0   :  { %v363_v15 = vpop.xlane.xlu1 %362 }
 0x2c1   :  { %v364_v16 = vrot.slane %v363_v15, 4 }
 0x2c3   :  { %v365_v0 = vadd.f32 %v364_v16, %v363_v15 }
 0x2c4   :  { %v384_v17 = vpop.xlane.xlu1 %383 }
 0x2c5   :  { %v366_v18 = vrot.slane %v365_v0, 2  ;;  %v385_v19 = vrot.slane %v384_v17, 4 }
 0x2c7   :  { %v386_v20 = vadd.f32 %v385_v19, %v384_v17  ;;  %v367_v21 = vadd.f32 %v366_v18, %v365_v0 }
 0x2c8   :  { %v396_v22 = vpop.xlane.xlu1 %395 }
 0x2c9   :  { %v387_v23 = vrot.slane %v386_v20, 2  ;;  %v397_v24 = vrot.slane %v396_v22, 4  ;;  %v374_v25 = vpop.xlane.xlu0 %373  ;;  %v368_v26 = vrot.slane %v367_v21, 1 }
 0x2ca   :  { %v375_v27 = vrot.slane %v374_v25, 4 }
 0x2cb   :  { %v398_v28 = vadd.f32 %v397_v24, %v396_v22  ;;  %v369_v29 = vadd.f32 %v368_v26, %v367_v21  ;;  %v388_v33 = vadd.f32 %v387_v23, %v386_v20 }
 0x2cc   :  { %v376_v30 = vadd.f32 %v375_v27, %v374_v25 }
 0x2cd   :  { %v399_v31 = vrot.slane %v398_v28, 2  ;;  %v410_v32 = vpop.xlane.xlu0 %409  ;;  %461 = vpush %v369_v29  ;;  %v389_v39 = vrot.slane %v388_v33, 1 }
 0x2ce   :  { %v377_v34 = vrot.slane %v376_v30, 2  ;;  %v411_v35 = vrot.slane %v410_v32, 4 }
 0x2cf   :  { %v400_v36 = vadd.f32 %v399_v31, %v398_v28  ;;  %v390_v46 = vadd.f32 %v389_v39, %v388_v33 }
 0x2d0   :  { %v412_v37 = vadd.f32 %v411_v35, %v410_v32  ;;  %v378_v38 = vadd.f32 %v377_v34, %v376_v30 }
 0x2d1   :  { %v401_v40 = vrot.slane %v400_v36, 1 }
 0x2d2   :  { %v413_v41 = vrot.slane %v412_v37, 2  ;;  %v379_v42 = vrot.slane %v378_v38, 1 }
 0x2d3   :  { %v402_v45 = vadd.f32 %v401_v40, %v400_v36 }
 0x2d4   :  { %v414_v43 = vadd.f32 %v413_v41, %v412_v37  ;;  %v380_v44 = vadd.f32 %v379_v42, %v378_v38 }
 0x2d6   :  { %463 = vpush %v380_v44  ;;  %v415_v47 = vrot.slane %v414_v43, 1 }
 0x2d7   :  { %465 = vpush %v390_v46 }
 0x2d8   :  { %467 = vpush %v402_v45  ;;  %v416_v48 = vadd.f32 %v415_v47, %v414_v43 }
 0x2da   :  { %469 = vpush %v416_v48 }
 0x2fe   :  { %s462_s1 = spop %461 }
 0x307   :  { %s464_s4 = spop %463 }
 0x308   :  { %s466_s5 = spop %465 }
 0x309   :  { %s392_s6 = smul.f32 8.0, %s466_s5  ;;  %s468_s8 = spop %467 }
 0x30b   :  { %s393_s7 = ssub.f32 %s464_s4, %s392_s6  ;;  %s470_s10 = spop %469 }
 0x30c   :  { %s404_s9 = ssub.f32 %s468_s8, %s392_s6  ;;  %s426_s12 = smul.f32 2.0, %s470_s10 }
 0x30e   :  { %s418_s11 = smul.f32 %s404_s9, %s393_s7 }
 0x30f   :  { %s429_s16 = smul.f32 0.16666667, %s426_s12 }
 0x310   :  { %s421_s13 = smul.f32 0.14285715, %s418_s11 }
 0x312   :  { %s424_s14 = smul.f32 0.16666667, %s421_s13 }
 0x314   :  { %s425_s15 = sadd.f32 %s462_s1, %s424_s14 }
 0x316   :  { %s430_s17 = ssub.f32 %s425_s15, %s429_s16 }
 0x318   :  { %s433_s18 = smul.f32 0.025, %s430_s17 }
 0x31a   :  { %435 = sst [smem:[#allocation9]] %s433_s18 }
 0x31b   :  { %538 = shalt.err (!%p535_p4)
}
 0x31c   :  { %s551_s26 = smov [#allocation9]  }
 0x31d   :  { %443 = dma.smem_to_hbm %s551_s26, 16, %s623_s2, [#allocation6]  }
 0x31e   :  { %543 = dma.done.wait [#allocation6], 16  }
 0x31f   :  { %544 = vsyncadd [#allocation6], 4294967280 }
 0x320   :  { %447 = sfence }
 0x321   :  { %448 = vsyncpa [#allocation5], 1 }
 0x322   :  { %449 = vsyncpa [#allocation8], 1 }
 0x323   :  { %450 = vsyncpa [#allocation6], 1 }

</bundles_post_ra>
